<compile_context>
chip_gen: v6e
topology: v6e:2x2x1
jax: 0.10.0
libtpu: 0.0.40
codegen_flags: <defaults>
</compile_context>

<pallas_src>
import jax
import jax.numpy as jnp
import numpy as np
from jax import lax
from jax.experimental import pallas as pl
from jax.experimental.pallas import tpu as pltpu


def _round_up(v, m):
    return (v + m - 1) // m * m


def _make_kernel(c2p, P, Wo2, tp):
    """One grid step = one (batch item, block of tp pool rows).

    a_ee/a_eo/a_oe/a_oo : (K_pad, P) compute-dtype im2col blocks, split by conv
                          output parity (row, col) in {even,odd} x {even,odd};
                          P = tp*Wo2 lane-dense pixels (pool-row-major).
    w_ref  : (c2p, K_pad) compute-dtype   conv weights with BN scale folded in
    b_ref  : (c2p, 1)     f32             folded BN bias
    lv_ref : (1, P)       f32             1.0 where pool column q > 0 else 0.0
    o_ref  : (c2p, P)                     pooled output block
    carry_ref : (c2p, Wo2) f32 scratch    last W-pooled odd conv row of the
                                          previous row block (H-pool halo)
    """

    def kernel(a_ee, a_eo, a_oe, a_oo, w_ref, b_ref, lv_ref, o_ref, carry_ref):
        # First row block of every image: the pool row above is the zero pad.
        @pl.when(pl.program_id(1) == 0)
        def _init():
            carry_ref[...] = jnp.zeros_like(carry_ref)

        w = w_ref[...]
        b = b_ref[...]
        lv = lv_ref[...]

        def conv_relu(a_ref):
            # conv (one MXU matmul, f32 accumulation) + folded BN + ReLU
            y = jnp.dot(w, a_ref[...], preferred_element_type=jnp.float32)
            return jnp.maximum(y + b, 0.0)                    # (c2p, P) f32, >= 0

        y_ee = conv_relu(a_ee)      # even conv rows, even conv cols
        y_eo = conv_relu(a_eo)      # even conv rows, odd  conv cols
        y_oe = conv_relu(a_oe)      # odd  conv rows, even conv cols
        y_oo = conv_relu(a_oo)      # odd  conv rows, odd  conv cols

        # ---- maxpool along W: pool col q = max(odd[q-1], even[q], odd[q]).
        # Static 1-lane shift on a pool-sized tile; q == 0 gets the zero pad via
        # the lv mask (exact because values are >= 0 after ReLU).
        # (pltpu.roll also works; the concat form is guaranteed to lower for
        #  lane extents that are not multiples of 128, and these tiles are 4x
        #  smaller than the conv output.)
        def left_of(v):
            if P > 1:
                s = jnp.concatenate(
                    [jnp.zeros((c2p, 1), jnp.float32), v[:, :P - 1]], axis=1)
            else:
                s = jnp.zeros_like(v)
            return s * lv

        cm_e = jnp.maximum(jnp.maximum(y_ee, y_eo), left_of(y_eo))  # even rows
        cm_o = jnp.maximum(jnp.maximum(y_oe, y_oo), left_of(y_oo))  # odd rows

        # ---- maxpool along H: pool row p = max(odd[p-1], even[p], odd[p]).
        if tp > 1:
            up = jnp.concatenate(
                [jnp.zeros((c2p, Wo2), jnp.float32), cm_o[:, :P - Wo2]], axis=1)
        else:
            up = jnp.zeros_like(cm_o)
        pooled = jnp.maximum(jnp.maximum(cm_e, cm_o), up)

        # First pool row of this block also needs the previous block's last odd
        # conv row (the carry).  Lanes >= Wo2 see 0, a no-op under max (>= 0).
        if tp > 1:
            carry_wide = jnp.concatenate(
                [carry_ref[...], jnp.zeros((c2p, P - Wo2), jnp.float32)], axis=1)
        else:
            carry_wide = carry_ref[...]
        pooled = jnp.maximum(pooled, carry_wide)

        # Carry this block's last (W-pooled) odd conv row to the next row block.
        carry_ref[...] = cm_o[:, P - Wo2:]

        o_ref[...] = pooled.astype(o_ref.dtype)

    return kernel


def conv_bn_relu_maxpool_forward(x, conv_w, gamma, beta, running_mean,
                                 running_var, eps=1e-5,
                                 compute_dtype=jnp.bfloat16):
    """Pallas TPU implementation of conv_bn_relu_maxpool.forward (eval-mode BN)."""
    N, C, H, W = x.shape
    c2 = conv_w.shape[0]
    assert conv_w.shape == (c2, C, 3, 3)
    # TODO(synk): shapes with H or W not divisible by 4 (conv/pool outputs that
    #             do not halve exactly) are unsupported.
    assert H % 4 == 0 and W % 4 == 0, "kernel assumes H, W divisible by 4"
    Ho, Wo = H // 2, W // 2            # after conv  (3x3, stride 2, pad 1)
    Ho2, Wo2 = Ho // 2, Wo // 2        # after pool  (3x3, stride 2, pad 1)

    # ---- fold eval-mode BatchNorm into per-output-channel scale / bias ----
    # TODO(synk): training-mode BatchNorm (batch statistics + running-stat
    #             updates) is not implemented; eval-mode running stats are used.
    scale = (gamma / jnp.sqrt(running_var + eps)).astype(jnp.float32)      # (c2,)
    bias = (beta.astype(jnp.float32)
            - running_mean.astype(jnp.float32) * scale)                    # (c2,)

    K = 9 * C
    K_pad = _round_up(K, 16)           # bf16 sublane packing / MXU-friendly K
    c2p = _round_up(c2, 8)

    itemsize_c = jnp.dtype(compute_dtype).itemsize
    itemsize_o = jnp.dtype(x.dtype).itemsize

    wmat = conv_w.astype(jnp.float32) * scale[:, None, None, None]
    wmat = wmat.transpose(0, 2, 3, 1).reshape(c2, K)       # [o, (ki*3+kj)*C + c]
    wmat = jnp.pad(wmat, ((0, c2p - c2), (0, K_pad - K))).astype(compute_dtype)
    bvec = jnp.pad(bias, (0, c2p - c2)).reshape(c2p, 1)

    # ---- wrapper-side im2col, split 4 ways by conv-output parity -------------
    # A_{rp,cp}[n, t*C + c, p*Wo2 + q] = xpad[n, c, 4p + 2rp + ki, 4q + 2cp + kj]
    # with t = ki*3 + kj, i.e. the tap values for conv output pixel (2p+rp, 2q+cp).
    # Pure layout plumbing done once by XLA; it removes every reshape, stride-2
    # gather and transpose from the kernel body.
    # TODO(synk): if this pre-pass ever shows up as a separate HBM round trip at
    #             large H, W, fuse it into the kernel with manual strided DMA.
    xpad = jnp.pad(x.astype(jnp.float32), ((0, 0), (0, 0), (1, 1), (1, 1)))

    def tap_matrix(rp, cp):
        slabs = []
        for ki in range(3):
            for kj in range(3):
                h0, w0 = 2 * rp + ki, 2 * cp + kj
                s = lax.slice(xpad, (0, 0, h0, w0),
                              (N, C, h0 + 4 * (Ho2 - 1) + 1,
                               w0 + 4 * (Wo2 - 1) + 1),
                              (1, 1, 4, 4))                    # (N, C, Ho2, Wo2)
                slabs.append(s)
        a = jnp.stack(slabs, axis=1).reshape(N, K, Ho2 * Wo2)  # tap-major rows
        a = jnp.pad(a, ((0, 0), (0, K_pad - K), (0, 0)))
        return a.astype(compute_dtype)

    a_ee, a_eo = tap_matrix(0, 0), tap_matrix(0, 1)
    a_oe, a_oo = tap_matrix(1, 0), tap_matrix(1, 1)

    # ---- pool-row block size (tp pool rows per grid step) ---------------------
    # Mosaic block rule: the last block dim must be a multiple of 128 lanes or
    # the whole axis, so row tiling only activates when tp*Wo2 can hit a
    # multiple of 128; otherwise one block covers all rows and only the batch
    # axis is tiled.
    # TODO(synk): pad Wo2 (e.g. 56 -> 64) to unlock row tiling / unmasked stores
    #             for stem-sized images.
    per_row_bytes = Wo2 * (4 * K_pad * itemsize_c * 2          # A blocks, 2 bufs
                           + c2p * itemsize_o * 2              # out block, 2 bufs
                           + (c2p + 1) * 4 * 12)               # f32 temporaries
    budget = 8 * 2 ** 20            # per-step budget; fits v5e's 16 MiB default
    candidates = [t for t in range(1, Ho2 + 1)
                  if Ho2 % t == 0 and (t == Ho2 or (t * Wo2) % 128 == 0)]
    fitting = [t for t in candidates if t * per_row_bytes <= budget]
    tp = max(fitting) if fitting else min(candidates)
    R = Ho2 // tp
    P = tp * Wo2

    lv = jnp.asarray((np.arange(P) % Wo2 != 0).astype(np.float32).reshape(1, P))

    # ---- explicit VMEM budget + cost estimate ---------------------------------
    step_bytes = (4 * K_pad * P * itemsize_c * 2 +
                  c2p * K_pad * itemsize_c * 2 +
                  c2p * P * itemsize_o * 2 +
                  (c2p + 1) * P * 4 * 12)
    vmem_limit = int(min(64 * 2 ** 20, max(4 * 2 ** 20, 2 * step_bytes)))
    cost = pl.CostEstimate(
        flops=2 * N * c2 * K * Ho * Wo,
        transcendentals=0,
        bytes_accessed=int(4 * N * K_pad * Ho2 * Wo2 * itemsize_c
                           + c2p * K_pad * itemsize_c + c2p * 4
                           + N * c2p * Ho2 * Wo2 * itemsize_o))

    out = pl.pallas_call(
        _make_kernel(c2p, P, Wo2, tp),
        out_shape=jax.ShapeDtypeStruct((N, c2p, Ho2 * Wo2), x.dtype),
        grid=(N, R),
        in_specs=[
            pl.BlockSpec((None, K_pad, P), lambda i, j: (i, 0, j)),
            pl.BlockSpec((None, K_pad, P), lambda i, j: (i, 0, j)),
            pl.BlockSpec((None, K_pad, P), lambda i, j: (i, 0, j)),
            pl.BlockSpec((None, K_pad, P), lambda i, j: (i, 0, j)),
            pl.BlockSpec((c2p, K_pad), lambda i, j: (0, 0)),
            pl.BlockSpec((c2p, 1), lambda i, j: (0, 0)),
            pl.BlockSpec((1, P), lambda i, j: (0, 0)),
        ],
        out_specs=pl.BlockSpec((None, c2p, P), lambda i, j: (i, 0, j)),
        scratch_shapes=[pltpu.VMEM((c2p, Wo2), jnp.float32)],
        compiler_params=pltpu.CompilerParams(
            dimension_semantics=("parallel", "arbitrary"),
            vmem_limit_bytes=vmem_limit),
        cost_estimate=cost,
    )(a_ee, a_eo, a_oe, a_oo, wmat, bvec, lv)

    return out[:, :c2, :].reshape(N, c2, Ho2, Wo2)


def _reference_f32(x, conv_w, gamma, beta, running_mean, running_var, eps=1e-5):
    """Exact f32 PyTorch-equivalent semantics (eval-mode BN)."""
    y = lax.conv_general_dilated(
        x, conv_w, window_strides=(2, 2), padding=((1, 1), (1, 1)),
        dimension_numbers=("NCHW", "OIHW", "NCHW"),
        precision=lax.Precision.HIGHEST)
    inv = (gamma / jnp.sqrt(running_var + eps))[None, :, None, None]
    y = (y - running_mean[None, :, None, None]) * inv + beta[None, :, None, None]
    y = jnp.maximum(y, 0.0)
    return lax.reduce_window(
        y, -jnp.inf, lax.max,
        window_dimensions=(1, 1, 3, 3), window_strides=(1, 1, 2, 2),
        padding=((0, 0), (0, 0), (1, 1), (1, 1)))


def _reference_matched(x, conv_w, gamma, beta, running_mean, running_var,
                       eps=1e-5, compute_dtype=jnp.bfloat16):
    """Same math as the kernel: BN folded into the weights, inputs/weights
    rounded to compute_dtype, f32 accumulation and f32 epilogue."""
    scale = gamma / jnp.sqrt(running_var + eps)
    bias = beta - running_mean * scale
    wq = ((conv_w * scale[:, None, None, None])
          .astype(compute_dtype).astype(jnp.float32))
    xq = x.astype(compute_dtype).astype(jnp.float32)
    y = lax.conv_general_dilated(
        xq, wq, window_strides=(2, 2), padding=((1, 1), (1, 1)),
        dimension_numbers=("NCHW", "OIHW", "NCHW"),
        precision=lax.Precision.HIGHEST)
    y = jnp.maximum(y + bias[None, :, None, None], 0.0)
    return lax.reduce_window(
        y, -jnp.inf, lax.max,
        window_dimensions=(1, 1, 3, 3), window_strides=(1, 1, 2, 2),
        padding=((0, 0), (0, 0), (1, 1), (1, 1)))


if __name__ == "__main__":
    key = jax.random.PRNGKey(0)
    k1, k2, k3, k4, k5, k6 = jax.random.split(key, 6)

    N, c1, c2, H, W = 2, 4, 8, 16, 16
    x = jax.random.normal(k1, (N, c1, H, W), jnp.float32)

    bound = 1.0 / np.sqrt(c1 * 9)
    conv_w = jax.random.uniform(k2, (c2, c1, 3, 3), jnp.float32, -bound, bound)
    gamma = jax.random.uniform(k3, (c2,), jnp.float32, 0.5, 1.5)
    beta = jax.random.uniform(k4, (c2,), jnp.float32, -0.5, 0.5)
    running_mean = jax.random.uniform(k5, (c2,), jnp.float32, -0.2, 0.2)
    running_var = jax.random.uniform(k6, (c2,), jnp.float32, 0.5, 1.5)

    fwd = jax.jit(conv_bn_relu_maxpool_forward)
    out = jax.block_until_ready(
        fwd(x, conv_w, gamma, beta, running_mean, running_var))

    # Strict check: reference with the same bf16 input rounding as the kernel.
    ref_m = _reference_matched(x, conv_w, gamma, beta, running_mean, running_var)
    np.testing.assert_allclose(np.asarray(out), np.asarray(ref_m),
                               rtol=1e-4, atol=1e-4)

    # Loose check: exact f32 PyTorch-equivalent semantics (bf16 MXU-input noise).
    ref = _reference_f32(x, conv_w, gamma, beta, running_mean, running_var)
    np.testing.assert_allclose(np.asarray(out), np.asarray(ref),
                               rtol=5e-2, atol=5e-2)

    print("KERNEL_OK")
</pallas_src>

<mosaic_0001>
module attributes {stable_mosaic.version = 11 : i64} {
  func.func @kernel(%arg0: i32, %arg1: i32, %arg2: memref<1x48x16xbf16, #tpu.memory_space<vmem>>, %arg3: memref<1x48x16xbf16, #tpu.memory_space<vmem>>, %arg4: memref<1x48x16xbf16, #tpu.memory_space<vmem>>, %arg5: memref<1x48x16xbf16, #tpu.memory_space<vmem>>, %arg6: memref<8x48xbf16, #tpu.memory_space<vmem>>, %arg7: memref<8x1xf32, #tpu.memory_space<vmem>>, %arg8: memref<1x16xf32, #tpu.memory_space<vmem>>, %arg9: memref<1x8x16xf32, #tpu.memory_space<vmem>>, %arg10: memref<8x4xf32, #tpu.memory_space<vmem>>) attributes {dimension_semantics = [#tpu.dimension_semantics<parallel>, #tpu.dimension_semantics<arbitrary>], iteration_bounds = array<i64: 2, 1>, scalar_prefetch = 0 : i64, scratch_operands = 1 : i64, tpu.core_type = #tpu.core_type<tc>, window_params = [{transform_indices = @transform_0, window_bounds = array<i64: 1, 48, 16>}, {transform_indices = @transform_1, window_bounds = array<i64: 1, 48, 16>}, {transform_indices = @transform_2, window_bounds = array<i64: 1, 48, 16>}, {transform_indices = @transform_3, window_bounds = array<i64: 1, 48, 16>}, {pipeline_mode = #tpu.pipeline_mode<synchronous>, transform_indices = @transform_4, window_bounds = array<i64: 8, 48>}, {pipeline_mode = #tpu.pipeline_mode<synchronous>, transform_indices = @transform_5, window_bounds = array<i64: 8, 1>}, {pipeline_mode = #tpu.pipeline_mode<synchronous>, transform_indices = @transform_6, window_bounds = array<i64: 1, 16>}, {transform_indices = @transform_7, window_bounds = array<i64: 1, 8, 16>}]} {
    %c0_i32 = arith.constant 0 : i32
    %0 = arith.cmpi eq, %arg1, %c0_i32 : i32
    %1 = arith.extui %0 : i1 to i32
    %c0_i32_0 = arith.constant 0 : i32
    %2 = arith.cmpi ne, %1, %c0_i32_0 : i32
    scf.if %2 {
      %cst_36 = arith.constant 0.000000e+00 : f32
      %62 = vector.broadcast %cst_36 : f32 to vector<8x4xf32>
      %c0_37 = arith.constant 0 : index
      %c0_38 = arith.constant 0 : index
      %63 = vector.load %arg10[%c0_37, %c0_38] : memref<8x4xf32, #tpu.memory_space<vmem>>, vector<8x4xf32>
      tpu.vector_store %arg10[%c0_37, %c0_38], %62 {strides = array<i32>} : memref<8x4xf32, #tpu.memory_space<vmem>>, vector<8x4xf32>,
    } else {
    }
    %c0 = arith.constant 0 : index
    %c0_1 = arith.constant 0 : index
    %3 = vector.load %arg6[%c0, %c0_1] : memref<8x48xbf16, #tpu.memory_space<vmem>>, vector<8x48xbf16>
    %c0_2 = arith.constant 0 : index
    %c0_3 = arith.constant 0 : index
    %4 = vector.load %arg7[%c0_2, %c0_3] : memref<8x1xf32, #tpu.memory_space<vmem>>, vector<8x1xf32>
    %c0_4 = arith.constant 0 : index
    %c0_5 = arith.constant 0 : index
    %5 = vector.load %arg8[%c0_4, %c0_5] : memref<1x16xf32, #tpu.memory_space<vmem>>, vector<1x16xf32>
    %c0_6 = arith.constant 0 : index
    %c0_7 = arith.constant 0 : index
    %c0_8 = arith.constant 0 : index
    %6 = vector.load %arg2[%c0_6, %c0_7, %c0_8] : memref<1x48x16xbf16, #tpu.memory_space<vmem>>, vector<1x48x16xbf16>
    %7 = vector.shape_cast %6 : vector<1x48x16xbf16> to vector<48x16xbf16>
    %cst = arith.constant dense<0.000000e+00> : vector<8x16xf32>
    %8 = tpu.matmul %3, %7, %cst {dimension_numbers = #tpu.dot_dimension_numbers<[1], [0], [0], [1], [0, 0, 1, 1], [], []>} : vector<8x48xbf16>, vector<48x16xbf16>, vector<8x16xf32> -> vector<8x16xf32>
    %9 = vector.broadcast %4 : vector<8x1xf32> to vector<8x16xf32>
    %10 = arith.addf %8, %9 : vector<8x16xf32>
    %cst_9 = arith.constant 0.000000e+00 : f32
    %11 = vector.broadcast %cst_9 : f32 to vector<8x16xf32>
    %12 = arith.maximumf %10, %11 : vector<8x16xf32>
    %c0_10 = arith.constant 0 : index
    %c0_11 = arith.constant 0 : index
    %c0_12 = arith.constant 0 : index
    %13 = vector.load %arg3[%c0_10, %c0_11, %c0_12] : memref<1x48x16xbf16, #tpu.memory_space<vmem>>, vector<1x48x16xbf16>
    %14 = vector.shape_cast %13 : vector<1x48x16xbf16> to vector<48x16xbf16>
    %cst_13 = arith.constant dense<0.000000e+00> : vector<8x16xf32>
    %15 = tpu.matmul %3, %14, %cst_13 {dimension_numbers = #tpu.dot_dimension_numbers<[1], [0], [0], [1], [0, 0, 1, 1], [], []>} : vector<8x48xbf16>, vector<48x16xbf16>, vector<8x16xf32> -> vector<8x16xf32>
    %16 = vector.broadcast %4 : vector<8x1xf32> to vector<8x16xf32>
    %17 = arith.addf %15, %16 : vector<8x16xf32>
    %cst_14 = arith.constant 0.000000e+00 : f32
    %18 = vector.broadcast %cst_14 : f32 to vector<8x16xf32>
    %19 = arith.maximumf %17, %18 : vector<8x16xf32>
    %c0_15 = arith.constant 0 : index
    %c0_16 = arith.constant 0 : index
    %c0_17 = arith.constant 0 : index
    %20 = vector.load %arg4[%c0_15, %c0_16, %c0_17] : memref<1x48x16xbf16, #tpu.memory_space<vmem>>, vector<1x48x16xbf16>
    %21 = vector.shape_cast %20 : vector<1x48x16xbf16> to vector<48x16xbf16>
    %cst_18 = arith.constant dense<0.000000e+00> : vector<8x16xf32>
    %22 = tpu.matmul %3, %21, %cst_18 {dimension_numbers = #tpu.dot_dimension_numbers<[1], [0], [0], [1], [0, 0, 1, 1], [], []>} : vector<8x48xbf16>, vector<48x16xbf16>, vector<8x16xf32> -> vector<8x16xf32>
    %23 = vector.broadcast %4 : vector<8x1xf32> to vector<8x16xf32>
    %24 = arith.addf %22, %23 : vector<8x16xf32>
    %cst_19 = arith.constant 0.000000e+00 : f32
    %25 = vector.broadcast %cst_19 : f32 to vector<8x16xf32>
    %26 = arith.maximumf %24, %25 : vector<8x16xf32>
    %c0_20 = arith.constant 0 : index
    %c0_21 = arith.constant 0 : index
    %c0_22 = arith.constant 0 : index
    %27 = vector.load %arg5[%c0_20, %c0_21, %c0_22] : memref<1x48x16xbf16, #tpu.memory_space<vmem>>, vector<1x48x16xbf16>
    %28 = vector.shape_cast %27 : vector<1x48x16xbf16> to vector<48x16xbf16>
    %cst_23 = arith.constant dense<0.000000e+00> : vector<8x16xf32>
    %29 = tpu.matmul %3, %28, %cst_23 {dimension_numbers = #tpu.dot_dimension_numbers<[1], [0], [0], [1], [0, 0, 1, 1], [], []>} : vector<8x48xbf16>, vector<48x16xbf16>, vector<8x16xf32> -> vector<8x16xf32>
    %30 = vector.broadcast %4 : vector<8x1xf32> to vector<8x16xf32>
    %31 = arith.addf %29, %30 : vector<8x16xf32>
    %cst_24 = arith.constant 0.000000e+00 : f32
    %32 = vector.broadcast %cst_24 : f32 to vector<8x16xf32>
    %33 = arith.maximumf %31, %32 : vector<8x16xf32>
    %34 = arith.maximumf %12, %19 : vector<8x16xf32>
    %cst_25 = arith.constant 0.000000e+00 : f32
    %35 = vector.broadcast %cst_25 : f32 to vector<8x1xf32>
    %36 = vector.extract_strided_slice %19 {offsets = [0, 0], sizes = [8, 15], strides = [1, 1]} : vector<8x16xf32> to vector<8x15xf32>
    %37 = tpu.concatenate %35, %36 in 1 : vector<8x1xf32>, vector<8x15xf32> -> vector<8x16xf32>
    %38 = vector.broadcast %5 : vector<1x16xf32> to vector<8x16xf32>
    %39 = arith.mulf %37, %38 : vector<8x16xf32>
    %40 = arith.maximumf %34, %39 : vector<8x16xf32>
    %41 = arith.maximumf %26, %33 : vector<8x16xf32>
    %cst_26 = arith.constant 0.000000e+00 : f32
    %42 = vector.broadcast %cst_26 : f32 to vector<8x1xf32>
    %43 = vector.extract_strided_slice %33 {offsets = [0, 0], sizes = [8, 15], strides = [1, 1]} : vector<8x16xf32> to vector<8x15xf32>
    %44 = tpu.concatenate %42, %43 in 1 : vector<8x1xf32>, vector<8x15xf32> -> vector<8x16xf32>
    %45 = vector.broadcast %5 : vector<1x16xf32> to vector<8x16xf32>
    %46 = arith.mulf %44, %45 : vector<8x16xf32>
    %47 = arith.maximumf %41, %46 : vector<8x16xf32>
    %cst_27 = arith.constant 0.000000e+00 : f32
    %48 = vector.broadcast %cst_27 : f32 to vector<8x4xf32>
    %49 = vector.extract_strided_slice %47 {offsets = [0, 0], sizes = [8, 12], strides = [1, 1]} : vector<8x16xf32> to vector<8x12xf32>
    %50 = tpu.concatenate %48, %49 in 1 : vector<8x4xf32>, vector<8x12xf32> -> vector<8x16xf32>
    %51 = arith.maximumf %40, %47 : vector<8x16xf32>
    %52 = arith.maximumf %51, %50 : vector<8x16xf32>
    %c0_28 = arith.constant 0 : index
    %c0_29 = arith.constant 0 : index
    %53 = vector.load %arg10[%c0_28, %c0_29] : memref<8x4xf32, #tpu.memory_space<vmem>>, vector<8x4xf32>
    %cst_30 = arith.constant 0.000000e+00 : f32
    %54 = vector.broadcast %cst_30 : f32 to vector<8x12xf32>
    %55 = tpu.concatenate %53, %54 in 1 : vector<8x4xf32>, vector<8x12xf32> -> vector<8x16xf32>
    %56 = arith.maximumf %52, %55 : vector<8x16xf32>
    %57 = vector.extract_strided_slice %47 {offsets = [0, 12], sizes = [8, 4], strides = [1, 1]} : vector<8x16xf32> to vector<8x4xf32>
    %c0_31 = arith.constant 0 : index
    %c0_32 = arith.constant 0 : index
    %58 = vector.load %arg10[%c0_31, %c0_32] : memref<8x4xf32, #tpu.memory_space<vmem>>, vector<8x4xf32>
    tpu.vector_store %arg10[%c0_31, %c0_32], %57 {strides = array<i32>} : memref<8x4xf32, #tpu.memory_space<vmem>>, vector<8x4xf32>,
    %c0_33 = arith.constant 0 : index
    %c0_34 = arith.constant 0 : index
    %c0_35 = arith.constant 0 : index
    %59 = vector.load %arg9[%c0_33, %c0_34, %c0_35] : memref<1x8x16xf32, #tpu.memory_space<vmem>>, vector<1x8x16xf32>
    %60 = vector.shape_cast %59 : vector<1x8x16xf32> to vector<8x16xf32>
    %61 = vector.shape_cast %56 : vector<8x16xf32> to vector<1x8x16xf32>
    tpu.vector_store %arg9[%c0_33, %c0_34, %c0_35], %61 {strides = array<i32>} : memref<1x8x16xf32, #tpu.memory_space<vmem>>, vector<1x8x16xf32>,
    return
  }
  func.func @transform_0(%arg0: i32, %arg1: i32) -> (i32, i32, i32) {
    %c0_i32 = arith.constant 0 : i32
    %c0_i32_0 = arith.constant 0 : i32
    return %arg0, %c0_i32, %arg1 : i32, i32, i32
  }
  func.func @transform_1(%arg0: i32, %arg1: i32) -> (i32, i32, i32) {
    %c0_i32 = arith.constant 0 : i32
    %c0_i32_0 = arith.constant 0 : i32
    return %arg0, %c0_i32, %arg1 : i32, i32, i32
  }
  func.func @transform_2(%arg0: i32, %arg1: i32) -> (i32, i32, i32) {
    %c0_i32 = arith.constant 0 : i32
    %c0_i32_0 = arith.constant 0 : i32
    return %arg0, %c0_i32, %arg1 : i32, i32, i32
  }
  func.func @transform_3(%arg0: i32, %arg1: i32) -> (i32, i32, i32) {
    %c0_i32 = arith.constant 0 : i32
    %c0_i32_0 = arith.constant 0 : i32
    return %arg0, %c0_i32, %arg1 : i32, i32, i32
  }
  func.func @transform_4(%arg0: i32, %arg1: i32) -> (i32, i32) {
    %c0_i32 = arith.constant 0 : i32
    %c0_i32_0 = arith.constant 0 : i32
    %c0_i32_1 = arith.constant 0 : i32
    return %c0_i32, %c0_i32_0 : i32, i32
  }
  func.func @transform_5(%arg0: i32, %arg1: i32) -> (i32, i32) {
    %c0_i32 = arith.constant 0 : i32
    %c0_i32_0 = arith.constant 0 : i32
    %c0_i32_1 = arith.constant 0 : i32
    return %c0_i32, %c0_i32_0 : i32, i32
  }
  func.func @transform_6(%arg0: i32, %arg1: i32) -> (i32, i32) {
    %c0_i32 = arith.constant 0 : i32
    %c0_i32_0 = arith.constant 0 : i32
    %c0_i32_1 = arith.constant 0 : i32
    return %c0_i32, %c0_i32_0 : i32, i32
  }
  func.func @transform_7(%arg0: i32, %arg1: i32) -> (i32, i32, i32) {
    %c0_i32 = arith.constant 0 : i32
    %c0_i32_0 = arith.constant 0 : i32
    return %arg0, %c0_i32, %arg1 : i32, i32, i32
  }
}

</mosaic_0001>

<bundles_post_ra>
// kernel: conv_bn_relu_maxpool_forward.1
= control target key start
LH: loop header
LB: loop body
LE: loop exit
PB: predicated region body
PF: predicated region fallthrough
CT: control target
= control target key end

     0   :  { %s1050_s24 = smov 0   ;;  %s1052_s25 = smov 0   ;;  %s1134_s0 = inlined_call_operand.vmem [shape: bf16[2,48,16], index: 0, kind: input, shape index: {}]   ;;  %s1135_s1 = inlined_call_operand.vmem [shape: bf16[2,48,16], index: 1, kind: input, shape index: {}]   ;;  %s1136_s2 = inlined_call_operand.vmem [shape: bf16[2,48,16], index: 2, kind: input, shape index: {}]   ;;  %s1137_s3 = inlined_call_operand.vmem [shape: bf16[2,48,16], index: 3, kind: input, shape index: {}]   ;;  %s1138_s4 = inlined_call_operand.vmem [shape: bf16[8,48], index: 4, kind: input, shape index: {}]   ;;  %s1139_s5 = inlined_call_operand.vmem [shape: f32[8,1], index: 5, kind: input, shape index: {}]   ;;  %s1140_s6 = inlined_call_operand.vmem [shape: f32[1,16], index: 6, kind: input, shape index: {}]   ;;  %s1141_s7 = inlined_call_operand.vmem [shape: f32[2,8,16], index: 7, kind: output, shape index: {}]  }
   0x1   :  { %s1054_s26 = smov 0  }
   0x2 LB: > { %s29_s27 = sadd.s32 1, %s998_s25  ;;  %p855_p0 = scmp.ge.s32.totalorder %s1002_s26, 1  ;;  %s1002_s26 = sphi %s1054_s26, %s17_s26   ;;  %s998_s25 = sphi %s1052_s25, %s1143_s25   ;;  %s994_s24 = sphi %s1050_s24, %s1142_s24  }
   0x3   : > { %p31_p1 = scmp.ge.s32.totalorder %s29_s27, 2  ;;  %p301_p2 = scmp.lt.s32.totalorder %s1002_s26, 3 }
   0x5   : > { %s1145_s27 = smov (%p31_p1, %s29_s27), 0  ;;  %p302_p3 = pnand %p855_p0, %p301_p2 }
   0x6   : > { %p362_p4 = scmp.lt.s32.totalorder (!%p302_p3), %s994_s24, 1  ;;  %s1007_s22 = smov (!%p302_p3), 1  }
   0x7   : > { %305 = sbr.rel (%p302_p3) target bundleno = 479 (0x1df), region = 48  ;;  %s1008_s29 = smov (!%p302_p3), 116  }
   0xc   : > { %v1004_v0 = vmov 0.0   ;;  %v409_v1 = vld [vmem:[%s1139_s5] sm:$0xff]  ;;  %s1147_s24 = smov (!%p362_p4, %s994_s24), 1  ;;  %vm1005_vm0 = vmmov 0   ;;  %v1006_v2 = vmov 0   ;;  %vm440_vm1 = vcmask 392192  }
   0xd   : > { %896 = vmatprep.subr.bf16.mxu0 %v1004_v0  ;;  %906 = vmatprep.subr.bf16.mxu1 %v1004_v0  ;;  %s936_s30 = smul.u32 24, %s1147_s24  ;;  %v408_v9 = vld [vmem:[%s1138_s4] sm:$0xf]  ;;  %vm406_vm2 = vcmask 31744   ;;  %vm685_vm3 = vcmask 7168   ;;  %s860_s8 = sshll.u32 %s1147_s24, 3 }
   0xe   : > { %912 = vmatprep.mubr.msk.bf16.mxu1 %vm1005_vm0, %v1004_v0  ;;  %902 = vmatprep.mubr.msk.bf16.mxu0 %vm1005_vm0, %v1004_v0  ;;  %407 = vst.msk [vmem:[#allocation2] sm:$0xff] %vm406_vm2, %v1004_v0  ;;  %v877_v43 = vld [vmem:[%s1140_s6] ss:$0 sm:$0xff]  ;;  %s400_s11 = scalar_lea.vmem %s1141_s7, %s860_s8  ;;  %vm718_vm4 = vcmask 130048  }
   0xf   : > { %967 = vset.pattern.permute.xlu0 %v1006_v2  ;;  %s369_s10 = scalar_lea.vmem %s1134_s0, %s936_s30  ;;  %s377_s13 = scalar_lea.vmem %s1135_s1, %s936_s30 }
  0x10   : > { %419 = vperm.xlu0 %967, %v409_v1   ;;  %v968_v3 = vld [vmem:[%s369_s10 + $0x10] sm:$0xff]   ;;  %v970_v5 = vld [vmem:[%s369_s10 + $0x8] sm:$0xff]   ;;  %s385_s16 = scalar_lea.vmem %s1136_s2, %s936_s30  ;;  %v972_v7 = vld [vmem:[%s369_s10] sm:$0xff]   ;;  %s393_s19 = scalar_lea.vmem %s1137_s3, %s936_s30 }
  0x11   : > { %v969_v4 = vld [vmem:[%s377_s13 + $0x10] sm:$0xff]   ;;  %897 = vmatpush3.bf16.msra.mxu0 %v968_v3  ;;  %v971_v6 = vld [vmem:[%s377_s13 + $0x8] sm:$0xff]   ;;  %v973_v8 = vld [vmem:[%s377_s13] sm:$0xff]   ;;  %s1009_s30 = smov 4  }
  0x12   : > { %907 = vmatpush3.bf16.msra.mxu1 %v969_v4  ;;  %898 = vmatprep.subr.bf16.mxu0 %v1004_v0  ;;  %v974_v10 = vld [vmem:[%s385_s16 + $0x10] sm:$0xff]   ;;  %v976_v12 = vld [vmem:[%s385_s16 + $0x8] sm:$0xff]   ;;  %v978_v14 = vld [vmem:[%s385_s16] sm:$0xff]  }
  0x13   : > { %908 = vmatprep.subr.bf16.mxu1 %v1004_v0  ;;  %v975_v11 = vld [vmem:[%s393_s19 + $0x10] sm:$0xff]   ;;  %v977_v13 = vld [vmem:[%s393_s19 + $0x8] sm:$0xff]   ;;  %v979_v15 = vld [vmem:[%s393_s19] sm:$0xff]  }
  0x15   : > { %899 = vmatpush3.bf16.msra.mxu0 %v970_v5  ;;  %v711_v53 = vld [vmem:[#allocation2] sm:$0xff] }
  0x16   : > { %909 = vmatpush3.bf16.msra.mxu1 %v971_v6  ;;  %900 = vmatprep.subr.bf16.mxu0 %v1004_v0  ;;  %v712_v56 = vsel %vm406_vm2, %v711_v53, 0.0 }
  0x17   : > { %910 = vmatprep.subr.bf16.mxu1 %v1004_v0 }
  0x19   : > { %901 = vmatpush3.bf16.msra.mxu0 %v972_v7 }
  0x1a   : > { %911 = vmatpush3.bf16.msra.mxu1 %v973_v8  ;;  %916 = vmatprep.subr.bf16.mxu0 %v1004_v0 }
  0x1b   : > { %926 = vmatprep.subr.bf16.mxu1 %v1004_v0 }
  0x1c   : > { %903 = vmatmul.mubr.msk.bf16.vlgmr.msra.gmra.mxu0 %vm440_vm1, %v408_v9 }
  0x1d   : > { %913 = vmatmul.mubr.msk.bf16.vlgmr.msra.gmra.mxu1 %vm440_vm1, %v408_v9  ;;  %917 = vmatpush3.bf16.msra.mxu0 %v974_v10 }
  0x1e   : > { %927 = vmatpush3.bf16.msra.mxu1 %v975_v11  ;;  %918 = vmatprep.subr.bf16.mxu0 %v1004_v0 }
  0x1f   : > { %928 = vmatprep.subr.bf16.mxu1 %v1004_v0  ;;  %922 = vmatprep.mubr.msk.bf16.mxu0 %vm1005_vm0, %v1004_v0 }
  0x20   : > { %932 = vmatprep.mubr.msk.bf16.mxu1 %vm1005_vm0, %v1004_v0 }
  0x21   : > { %919 = vmatpush3.bf16.msra.mxu0 %v976_v12 }
  0x22   : > { %929 = vmatpush3.bf16.msra.mxu1 %v977_v13  ;;  %920 = vmatprep.subr.bf16.mxu0 %v1004_v0 }
  0x23   : > { %930 = vmatprep.subr.bf16.mxu1 %v1004_v0 }
  0x25   : > { %921 = vmatpush3.bf16.msra.mxu0 %v978_v14 }
  0x26   : > { %931 = vmatpush3.bf16.msra.mxu1 %v979_v15 }
  0x28   : > { %923 = vmatmul.mubr.msk.bf16.vlgmr.msra.gmra.mxu0 %vm440_vm1, %v408_v9 }
  0x29   : > { %933 = vmatmul.mubr.msk.bf16.vlgmr.msra.gmra.mxu1 %vm440_vm1, %v408_v9 }
  0x8b   : > { %v420_v16 = vpop.permute.xlu0 %419 }
  0xdc   : > { %v478_v17 = vpop.f32.mrf.mxu0 }
  0xdd   : > { %v543_v18 = vpop.f32.mrf.mxu1  ;;  %v479_v19 = vadd.f32 %v478_v17, %v420_v16 }
  0xde   : > { %v544_v20 = vadd.f32 %v543_v18, %v420_v16  ;;  %v904_v21 = vpop.f32.mrf.mxu0 }
  0xdf   : > { %v484_v22 = vmax.f32 %v479_v19, 0.0  ;;  %v914_v23 = vpop.f32.mrf.mxu1 }
  0xe0   : > { %v549_v24 = vmax.f32 %v544_v20, 0.0  ;;  %v481_v25 = vpop.f32.mrf.mxu0 }
  0xe1   : > { %v546_v26 = vpop.f32.mrf.mxu1 }
  0xe2   : > { %v680_v27 = vmax.f32 %v484_v22, %v549_v24  ;;  %682 = vrot.lane.b32.xlu1 %v549_v24, %s1007_s22  ;;  %v905_v28 = vpop.f32.mrf.mxu0 }
  0xe3   : > { %v915_v29 = vpop.f32.mrf.mxu1 }
  0xe8   : > { %v608_v30 = vpop.f32.mrf.mxu0 }
  0xe9   : > { %v609_v31 = vadd.f32 %v608_v30, %v420_v16  ;;  %v673_v32 = vpop.f32.mrf.mxu1 }
  0xea   : > { %v674_v33 = vadd.f32 %v673_v32, %v420_v16  ;;  %v924_v34 = vpop.f32.mrf.mxu0 }
  0xeb   : > { %v614_v35 = vmax.f32 %v609_v31, 0.0  ;;  %v934_v36 = vpop.f32.mrf.mxu1 }
  0xec   : > { %v679_v37 = vmax.f32 %v674_v33, 0.0  ;;  %v611_v38 = vpop.f32.mrf.mxu0 }
  0xed   : > { %v676_v39 = vpop.f32.mrf.mxu1 }
  0xee   : > { %v695_v40 = vmax.f32 %v614_v35, %v679_v37  ;;  %697 = vrot.lane.b32.xlu0 %v679_v37, %s1007_s22  ;;  %v925_v41 = vpop.f32.mrf.mxu0 }
  0xef   : > { %v935_v42 = vpop.f32.mrf.mxu1 }
 0x154   : > { %v683_v44 = vpop.permute.xlu1 %682 }
 0x155   : > { %v686_v45 = vsel %vm685_vm3, 0.0, %v683_v44 }
 0x156   : > { %v693_v46 = vmul.f32 %v877_v43, %v686_v45 }
 0x158   : > { %v694_v47 = vmax.f32 %v680_v27, %v693_v46 }
 0x160   : > { %v698_v48 = vpop.permute.xlu0 %697 }
 0x161   : > { %v700_v49 = vsel %vm685_vm3, 0.0, %v698_v48 }
 0x162   : > { %v701_v50 = vmul.f32 %v877_v43, %v700_v49 }
 0x164   : > { %v702_v51 = vmax.f32 %v695_v40, %v701_v50 }
 0x166   : > { %714 = vrot.lane.b32.xlu0 %v702_v51, %s1008_s29  ;;  %704 = vrot.lane.b32.xlu1 %v702_v51, %s1009_s30  ;;  %v709_v52 = vmax.f32 %v694_v47, %v702_v51 }
 0x1d8   : > { %v715_v54 = vpop.permute.xlu0 %714  ;;  %v705_v55 = vpop.permute.xlu1 %704 }
 0x1d9   : > { %717 = vst.msk [vmem:[#allocation2] sm:$0xff] %vm406_vm2, %v715_v54  ;;  %v708_v57 = vsel %vm406_vm2, 0.0, %v705_v55 }
 0x1da   : > { %v710_v58 = vmax.f32 %v709_v52, %v708_v57 }
 0x1dc   : > { %v713_v59 = vmax.f32 %v710_v58, %v712_v56 }
 0x1de   : > { %719 = vst.msk [vmem:[%s400_s11] sm:$0xff] %vm718_vm4, %v713_v59 }
 0x1df PF: > { %s17_s26 = sadd.s32 1, %s1002_s26   ;;  %s1142_s24 = smov %s998_s25 }
 0x1e0   : > { %p14_p5 = scmp.ge.s32.totalorder %s17_s26, 4   ;;  %s1143_s25 = smov %s1145_s27 }
 0x1e2   :  { %16 = sbr.rel (!%p14_p5) target bundleno = 2 (0x2), region = 91 }

</bundles_post_ra>
